<compile_context>
chip_gen: v7x
topology: tpu7x:2x2x1
jax: 0.10.0
libtpu: 0.0.40
codegen_flags: <defaults>
</compile_context>

<pallas_src>
import jax
import jax.numpy as jnp
from jax.experimental import pallas as pl
from jax.experimental.pallas import tpu as pltpu


def _round_up(n, m):
    return (n + m - 1) // m * m


def mlp_kernel(x_ref, w1_ref, w23_ref, b_ref, o_ref):
    # x_ref : (TB, D)  f32 (native dtype; cast in-kernel, hidden under the DMA)
    # w1    : (D, 10)  param_dtype
    # w23   : (11, 5)  param_dtype  -> rows 0:10 = w2 (in,out), row 10 = w3 (out,in)
    # b_ref : (1, 16)  f32          -> [0:10]=b1, [10:15]=b2, [15:16]=b3
    # o_ref : (1, TB)  f32 (lane-dense: batch on the 128-lane axis)
    w1 = w1_ref[...]
    w23 = w23_ref[...]
    b = b_ref[...]
    b1, b2, b3 = b[:, 0:10], b[:, 10:15], b[:, 15:16]

    x = x_ref[...].astype(w1.dtype)                   # in-kernel cast (no extra HBM pass)

    # Layer 1: MXU matmul, f32 accumulate; bias + ReLU in f32.
    h1 = jnp.dot(x, w1, preferred_element_type=jnp.float32)
    h1 = jnp.maximum(h1 + b1, 0.0)                    # (TB, 10) f32

    # Layer 2.
    h2 = jnp.dot(h1.astype(w23.dtype), w23[0:10, :], preferred_element_type=jnp.float32)
    h2 = jnp.maximum(h2 + b2, 0.0)                    # (TB, 5) f32

    # Layer 3, computed transposed so the result lands lane-dense as (1, TB):
    #   logits[0, b] = sum_k w3[0, k] * h2[b, k]
    logits = jnp.einsum("ok,bk->ob", w23[10:11, :], h2.astype(w23.dtype),
                        preferred_element_type=jnp.float32)   # (1, TB) f32
    o_ref[...] = jax.nn.sigmoid(logits + b3)


def binary_classifier_forward(x, params, *, block_rows=16384, param_dtype=jnp.bfloat16):
    """x: (B, input_dim) float32. Returns (B, 1) float32 (matches the PyTorch module).

    param_dtype: dtype used for the MXU matmul inputs (x is cast in-kernel, weights in
    the wrapper -- weights are tiny so this costs nothing). Use jnp.float32 to match the
    f32 PyTorch module bit-for-bit in policy; bf16 (default) halves x's effective MXU
    width with f32 accumulation and is validated below at loose tolerance.
    """
    B, D = x.shape

    # Pack operands: weights in (in, out) layout except w3 which is (out, in) = (1, 5).
    w1 = params["w1"].astype(param_dtype)                                    # (D, 10)
    w23 = jnp.concatenate([params["w2"], params["w3"]], axis=0).astype(param_dtype)  # (11,5)
    b_all = jnp.concatenate([params["b1"], params["b2"], params["b3"]], axis=1)       # (1,16) f32

    # Tile selection:
    #  - small batch: one tile covering the whole batch (rounded to the f32 sublane 8)
    #  - large batch: >= 4 grid steps (feeds both v7x TCs / keeps the pipeline busy),
    #    capped at block_rows, multiple of 128 so output blocks are lane-aligned.
    if B <= block_rows:
        tb = _round_up(max(B, 8), 8)
        num_tiles = 1
    else:
        tb = min(block_rows, _round_up(pl.cdiv(B, 4), 128))
        num_tiles = pl.cdiv(B, tb)
    out_cols = num_tiles * tb                         # output never written ragged

    # Constant index_maps -> weights/biases DMA'd once, VMEM-resident for the whole grid.
    def resident(a):
        return pl.BlockSpec(a.shape, lambda i: (0,) * a.ndim)

    out = pl.pallas_call(
        mlp_kernel,
        out_shape=jax.ShapeDtypeStruct((1, out_cols), jnp.float32),
        grid=(num_tiles,),
        in_specs=[
            # x streamed over batch, unpadded: the last block may read past B (undefined
            # rows), which are discarded by the [:B] slice below.
            pl.BlockSpec((tb, D), lambda i: (i, 0)),
            resident(w1),
            resident(w23),
            resident(b_all),
        ],
        out_specs=pl.BlockSpec((1, tb), lambda i: (0, i)),   # lane-dense output block
        compiler_params=pltpu.CompilerParams(
            dimension_semantics=("parallel",)),              # v7x: 2 TCs share the grid
    )(x, w1, w23, b_all)

    return out[0, :B].reshape(B, 1)


def init_params(key, input_dim):
    """torch.nn.Linear-style init: U(-1/sqrt(fan_in), 1/sqrt(fan_in)).
    w1/w2 are stored (in, out) so the kernel computes x @ W; w3 is stored (out, in) =
    (1, 5) so layer 3 contracts feature-vs-feature and yields a lane-dense (1, TB)."""
    params = {}
    for idx, (fan_in, fan_out) in enumerate([(input_dim, 10), (10, 5), (5, 1)], start=1):
        key, kw, kb = jax.random.split(key, 3)
        bound = 1.0 / jnp.sqrt(float(fan_in))
        w = jax.random.uniform(kw, (fan_in, fan_out), jnp.float32, -bound, bound)
        b = jax.random.uniform(kb, (1, fan_out), jnp.float32, -bound, bound)
        if idx == 3:
            w = w.T                                   # (1, 5): (out, in) layout
        params[f"w{idx}"] = w
        params[f"b{idx}"] = b
    return params


if __name__ == "__main__":
    key = jax.random.PRNGKey(0)
    k_x, k_p = jax.random.split(key)

    # Small test shapes; batch deliberately not a multiple of the tile so the
    # multi-step, unpadded ragged-last-block path is exercised.
    batch, input_dim = 1000, 32
    x = jax.random.normal(k_x, (batch, input_dim), jnp.float32)
    params = init_params(k_p, input_dim)

    # Multi-tile path (4 grid steps, ragged last x block). Production default tile is
    # 16384 rows; a small block_rows here just exercises the pipeline on a small batch.
    out = binary_classifier_forward(x, params, block_rows=256)
    jax.block_until_ready(out)
    assert out.shape == (batch, 1)

    # Single-tile path (default block_rows covers the whole batch) must agree exactly.
    out_single = binary_classifier_forward(x, params)
    jax.block_until_ready(out_single)
    assert jnp.allclose(out, out_single, atol=1e-6), "multi-tile vs single-tile mismatch"

    # Reference 1: mirror the kernel's bf16 rounding of x / weights / activations.
    r = lambda a: a.astype(jnp.bfloat16).astype(jnp.float32)
    h1 = jnp.maximum(r(x) @ r(params["w1"]) + params["b1"], 0.0)
    h2 = jnp.maximum(r(h1) @ r(params["w2"]) + params["b2"], 0.0)
    ref_bf16 = jax.nn.sigmoid(r(h2) @ r(params["w3"]).T + params["b3"])
    assert jnp.allclose(out, ref_bf16, atol=1e-2), "mismatch vs bf16-mirrored reference"

    # Reference 2: pure f32 math (the PyTorch module); loose tol covers bf16 matmuls.
    h1f = jnp.maximum(x @ params["w1"] + params["b1"], 0.0)
    h2f = jnp.maximum(h1f @ params["w2"] + params["b2"], 0.0)
    ref_f32 = jax.nn.sigmoid(h2f @ params["w3"].T + params["b3"])
    assert jnp.allclose(out, ref_f32, atol=5e-2), "mismatch vs f32 reference"

    # Exact-f32 policy must match the PyTorch module tightly.
    out_f32 = binary_classifier_forward(x, params, param_dtype=jnp.float32)
    jax.block_until_ready(out_f32)
    assert jnp.allclose(out_f32, ref_f32, atol=1e-5), "f32 policy mismatch vs f32 reference"

    print("KERNEL_OK")
</pallas_src>

<mosaic_0001>
module attributes {stable_mosaic.version = 11 : i64} {
  func.func @mlp_kernel(%arg0: i32, %arg1: memref<256x32xf32, #tpu.memory_space<vmem>>, %arg2: memref<32x10xbf16, #tpu.memory_space<vmem>>, %arg3: memref<11x5xbf16, #tpu.memory_space<vmem>>, %arg4: memref<1x16xf32, #tpu.memory_space<vmem>>, %arg5: memref<1x256xf32, #tpu.memory_space<vmem>>) attributes {dimension_semantics = [#tpu.dimension_semantics<parallel>], iteration_bounds = array<i64: 4>, scalar_prefetch = 0 : i64, scratch_operands = 0 : i64, tpu.core_type = #tpu.core_type<tc>, window_params = [{transform_indices = @transform_0, window_bounds = array<i64: 256, 32>}, {pipeline_mode = #tpu.pipeline_mode<synchronous>, transform_indices = @transform_1, window_bounds = array<i64: 32, 10>}, {pipeline_mode = #tpu.pipeline_mode<synchronous>, transform_indices = @transform_2, window_bounds = array<i64: 11, 5>}, {pipeline_mode = #tpu.pipeline_mode<synchronous>, transform_indices = @transform_3, window_bounds = array<i64: 1, 16>}, {transform_indices = @transform_4, window_bounds = array<i64: 1, 256>}]} {
    %c0 = arith.constant 0 : index
    %c0_0 = arith.constant 0 : index
    %0 = vector.load %arg2[%c0, %c0_0] : memref<32x10xbf16, #tpu.memory_space<vmem>>, vector<32x10xbf16>
    %c0_1 = arith.constant 0 : index
    %c0_2 = arith.constant 0 : index
    %1 = vector.load %arg3[%c0_1, %c0_2] : memref<11x5xbf16, #tpu.memory_space<vmem>>, vector<11x5xbf16>
    %c0_3 = arith.constant 0 : index
    %c0_4 = arith.constant 0 : index
    %2 = vector.load %arg4[%c0_3, %c0_4] : memref<1x16xf32, #tpu.memory_space<vmem>>, vector<1x16xf32>
    %3 = vector.extract_strided_slice %2 {offsets = [0, 0], sizes = [1, 10], strides = [1, 1]} : vector<1x16xf32> to vector<1x10xf32>
    %4 = vector.extract_strided_slice %2 {offsets = [0, 10], sizes = [1, 5], strides = [1, 1]} : vector<1x16xf32> to vector<1x5xf32>
    %5 = vector.extract_strided_slice %2 {offsets = [0, 15], sizes = [1, 1], strides = [1, 1]} : vector<1x16xf32> to vector<1x1xf32>
    %c0_5 = arith.constant 0 : index
    %c0_6 = arith.constant 0 : index
    %6 = vector.load %arg1[%c0_5, %c0_6] : memref<256x32xf32, #tpu.memory_space<vmem>>, vector<256x32xf32>
    %7 = arith.truncf %6 : vector<256x32xf32> to vector<256x32xbf16>
    %cst = arith.constant dense<0.000000e+00> : vector<256x10xf32>
    %8 = tpu.matmul %7, %0, %cst {dimension_numbers = #tpu.dot_dimension_numbers<[1], [0], [0], [1], [0, 0, 1, 1], [], []>} : vector<256x32xbf16>, vector<32x10xbf16>, vector<256x10xf32> -> vector<256x10xf32>
    %9 = vector.broadcast %3 : vector<1x10xf32> to vector<256x10xf32>
    %10 = arith.addf %8, %9 : vector<256x10xf32>
    %cst_7 = arith.constant 0.000000e+00 : f32
    %11 = vector.broadcast %cst_7 : f32 to vector<256x10xf32>
    %12 = arith.maximumf %10, %11 : vector<256x10xf32>
    %13 = arith.truncf %12 : vector<256x10xf32> to vector<256x10xbf16>
    %14 = vector.extract_strided_slice %1 {offsets = [0, 0], sizes = [10, 5], strides = [1, 1]} : vector<11x5xbf16> to vector<10x5xbf16>
    %cst_8 = arith.constant dense<0.000000e+00> : vector<256x5xf32>
    %15 = tpu.matmul %13, %14, %cst_8 {dimension_numbers = #tpu.dot_dimension_numbers<[1], [0], [0], [1], [0, 0, 1, 1], [], []>} : vector<256x10xbf16>, vector<10x5xbf16>, vector<256x5xf32> -> vector<256x5xf32>
    %16 = vector.broadcast %4 : vector<1x5xf32> to vector<256x5xf32>
    %17 = arith.addf %15, %16 : vector<256x5xf32>
    %cst_9 = arith.constant 0.000000e+00 : f32
    %18 = vector.broadcast %cst_9 : f32 to vector<256x5xf32>
    %19 = arith.maximumf %17, %18 : vector<256x5xf32>
    %20 = vector.extract_strided_slice %1 {offsets = [10, 0], sizes = [1, 5], strides = [1, 1]} : vector<11x5xbf16> to vector<1x5xbf16>
    %21 = arith.truncf %19 : vector<256x5xf32> to vector<256x5xbf16>
    "tpu.trace_start"() <{level = 10 : i32, message = "ok,bk->ob"}> : () -> ()
    %cst_10 = arith.constant dense<0.000000e+00> : vector<1x256xf32>
    %22 = tpu.matmul %20, %21, %cst_10 {dimension_numbers = #tpu.dot_dimension_numbers<[1], [1], [0], [0], [0, 0, 1, 0], [], []>} : vector<1x5xbf16>, vector<256x5xbf16>, vector<1x256xf32> -> vector<1x256xf32>
    "tpu.trace_stop"() : () -> ()
    %23 = vector.broadcast %5 : vector<1x1xf32> to vector<1x256xf32>
    %24 = arith.addf %22, %23 : vector<1x256xf32>
    %25 = arith.negf %24 : vector<1x256xf32>
    %26 = math.exp %25 : vector<1x256xf32>
    %cst_11 = arith.constant 1.000000e+00 : f32
    %27 = vector.broadcast %cst_11 : f32 to vector<1x256xf32>
    %28 = arith.addf %27, %26 : vector<1x256xf32>
    %29 = arith.divf %27, %28 : vector<1x256xf32>
    %c0_12 = arith.constant 0 : index
    %c0_13 = arith.constant 0 : index
    %30 = vector.load %arg5[%c0_12, %c0_13] : memref<1x256xf32, #tpu.memory_space<vmem>>, vector<1x256xf32>
    tpu.vector_store %arg5[%c0_12, %c0_13], %29 {strides = array<i32>} : memref<1x256xf32, #tpu.memory_space<vmem>>, vector<1x256xf32>,
    return
  }
  func.func @transform_0(%arg0: i32) -> (i32, i32) {
    %c0_i32 = arith.constant 0 : i32
    %c0_i32_0 = arith.constant 0 : i32
    return %arg0, %c0_i32 : i32, i32
  }
  func.func @transform_1(%arg0: i32) -> (i32, i32) {
    %c0_i32 = arith.constant 0 : i32
    %c0_i32_0 = arith.constant 0 : i32
    %c0_i32_1 = arith.constant 0 : i32
    return %c0_i32, %c0_i32_0 : i32, i32
  }
  func.func @transform_2(%arg0: i32) -> (i32, i32) {
    %c0_i32 = arith.constant 0 : i32
    %c0_i32_0 = arith.constant 0 : i32
    %c0_i32_1 = arith.constant 0 : i32
    return %c0_i32, %c0_i32_0 : i32, i32
  }
  func.func @transform_3(%arg0: i32) -> (i32, i32) {
    %c0_i32 = arith.constant 0 : i32
    %c0_i32_0 = arith.constant 0 : i32
    %c0_i32_1 = arith.constant 0 : i32
    return %c0_i32, %c0_i32_0 : i32, i32
  }
  func.func @transform_4(%arg0: i32) -> (i32, i32) {
    %c0_i32 = arith.constant 0 : i32
    %c0_i32_0 = arith.constant 0 : i32
    return %c0_i32, %arg0 : i32, i32
  }
}

</mosaic_0001>

<bundles_post_ra>
// kernel: tpu_custom_call.1
= control target key start
LH: loop header
LB: loop body
LE: loop exit
PB: predicated region body
PF: predicated region fallthrough
CT: control target
= control target key end

     0   :  { %9 = vsyncpa [#allocation3], 0  ;;  %s1679_s0 = inlined_call_operand.vmem [shape: f32[1000,32], index: 0, kind: input, shape index: {}]   ;;  %s1680_s1 = inlined_call_operand.vmem [shape: bf16[32,10], index: 1, kind: input, shape index: {}]   ;;  %s1681_s2 = inlined_call_operand.vmem [shape: bf16[11,5], index: 2, kind: input, shape index: {}]   ;;  %s1682_s3 = inlined_call_operand.vmem [shape: f32[1,16], index: 3, kind: input, shape index: {}]   ;;  %s1683_s4 = inlined_call_operand.hbm [shape: f32[1,1024], index: 4, kind: output, shape index: {}]  }
   0x1   :  { %11 = vsyncpa [#allocation3 + $0x1], 0  ;;  %s1365_s15 = smov 0   ;;  %s1367_s16 = smov 0  }
   0x2   :  { %s1369_s17 = smov 0   ;;  %s1371_s18 = smov 0  }
   0x3 LB: > { %s1032_s19 = sadd.s32 4294967295, %s1334_s18   ;;  %s1033_s20 = sadd.s32 4294967294, %s1334_s18   ;;  %s1334_s18 = sphi %s1371_s18, %s1689_s18   ;;  %s1330_s17 = sphi %s1369_s17, %s1688_s17   ;;  %s1326_s16 = sphi %s1367_s16, %s1687_s16   ;;  %s1322_s15 = sphi %s1365_s15, %s1686_s15  }
   0x4   : > { %s1388_s21 = sadd.s32 1, %s1334_s18   ;;  %s113_s22 = sadd.s32 1, %s1330_s17 }
   0x5   : > { %s110_s23 = ssub.s32 %s1334_s18, %s1388_s21  ;;  %p123_p0 = scmp.ne.s32.totalorder %s1330_s17, %s1326_s16 }
   0x6   : > { %p111_p1 = scmp.eq.s32.totalorder %s110_s23, 0  ;;  %p124_p2 = scmp.eq.s32.totalorder %s1032_s19, 3 }
   0x7   : > { %p129_p3 = scmp.ne.s32.totalorder %s1326_s16, %s1322_s15  ;;  %p130_p4 = scmp.eq.s32.totalorder %s1033_s20, 3 }
   0x8   : > { %s1398_s24 = scalar_select %p111_p1, %s1330_s17, %s113_s22  }
   0x9   : > { %p1400_p5 = por %p124_p2, %p123_p0  ;;  %p1404_p6 = por %p130_p4, %p129_p3 }
   0xa   : > { %p1036_p7 = scmp.ge.s32.totalorder %s1334_s18, 1  ;;  %p174_p8 = scmp.lt.s32.totalorder %s1334_s18, 5 }
   0xc   : > { %p175_p9 = pnand %p1036_p7, %p174_p8 }
   0xd   : > { %v1260_v0 = vld [vmem:[%s1680_s1] sm:$0xff] (!%p175_p9)   ;;  %s1413_s29 = sshll.u32 (!%p175_p9), %s1032_s19, 5  ;;  %v1261_v1 = vld [vmem:[%s1680_s1 + $0x8] sm:$0xff] (!%p175_p9)   ;;  %vm293_vm0 = vcmask (!%p175_p9), 261120   ;;  %vm608_vm1 = vcmask (!%p175_p9), 1044480   ;;  %v276_v54 = vlaneseq (!%p175_p9)  ;;  %s1336_s22 = smov (!%p175_p9), 118  }
   0xe   : > { %178 = sbr.rel (%p175_p9) target bundleno = 829 (0x33d), region = 36  ;;  %p209_p10 = scmp.lt.s32.totalorder (!%p175_p9), %s1413_s29, 124  ;;  %1138 = vmatprep.subr.bf16.mxu0 (!%p175_p9), %v1260_v0  ;;  %v224_v50 = vld [vmem:[%s1681_s2] sm:$0xf] (!%p175_p9)  ;;  %v1479_v51 = vld [vmem:[%s1681_s2 + $0x4] sm:$0x3] (!%p175_p9) }
   0xf   : > { %1139 = vmatpush3.bf16.msra.mxu0 (!%p175_p9), %v1260_v0  ;;  %v1058_v52 = vcombine.low (!%p175_p9), %v224_v50, %v1479_v51  ;;  %v1483_v55 = vshrl.u32 (!%p175_p9), %v276_v54, 7  ;;  %v1489_v57 = vld [vmem:[%s1682_s3] sm:$0x1] (!%p175_p9)  ;;  %vm559_vm2 = vcmask (!%p175_p9), 80896   ;;  %vm831_vm3 = vcmask (!%p175_p9), 39936   ;;  %s201_s23 = sand.u32 (!%p175_p9), 1, %s1326_s16  }
  0x10   : > { %1140 = vmatprep.subr.bf16.mxu0 (!%p175_p9), %v1261_v1  ;;  %s1037_s27 = sshll.u32 (!%p175_p9), %s201_s23, 1  ;;  %vm956_vm4 = vcmp.lt.s32.totalorder (!%p175_p9), %v276_v54, 256  ;;  %s960_s8 = scalar_lea.sflag (!%p175_p9), [#allocation3], %s201_s23 }
  0x11   : > { %1208 = vmatprep.subr.msk.bf16.mxu1 (!%p175_p9), %vm608_vm1, %v1058_v52  ;;  %v610_v53 = vsel (!%p175_p9), %vm608_vm1, %v1058_v52, 0  ;;  %v278_v56 = vsub.s32 (!%p175_p9), 0, %v1483_v55  ;;  %s203_s28 = scalar_lea.vmem (!%p175_p9), [#allocation2], %s1037_s27 }
  0x12   : > { %1175 = vmatpush3.bf16.msra.mxu1 (!%p175_p9), %v610_v53  ;;  %s974_s30 = sshll.u32 (!%p175_p9), %s203_s28, 4  ;;  %s1639_s30 = int_to_ptr.vmem [resolvable:$true] %s974_s30 }
  0x13   : > { %1141 = vmatpush3.bf16.msra.mxu0 (!%p175_p9), %v1261_v1  ;;  %v1494_v58 = vrot.slane (!%p175_p9), %v1489_v57, %v278_v56  ;;  %s1272_s9 = scalar_lea.vmem (!%p175_p9), %s1639_s30, 32 }
  0x14   : > { %p1273_p11 = scmp.ne.s32.totalorder (!%p175_p9), %s1639_s30, %s1272_s9 }
  0x15   : > { %s210_s6 = scalar_select %p209_p10, %s1413_s29, 124  ;;  %556 = vrot.lane.b32.xlu0 %v1494_v58, %s1336_s22 }
  0x16   : > { %p1274_p12 = pnand %p1273_p11, %p1400_p5 }
  0x17   : > { %s1039_s7 = sshll.u32 %s210_s6, 3 }
  0x18   : > { %s1423_s10 = scalar_lea.vmem %s1679_s0, %s1039_s7  ;;  %s1637_s7 = scalar_lea.hbm %s1683_s4, %s1413_s29 }
  0x19   : > { %v227_v2 = vld [vmem:[%s1423_s10] sm:$0xff]  ;;  %v228_v3 = vld [vmem:[%s1423_s10 + $0x8] sm:$0xff]  ;;  %v229_v4 = vld [vmem:[%s1423_s10 + $0x10] sm:$0xff]  ;;  %p1275_p13 = pneg %p1274_p12 }
  0x1a   : > { %v259_v5 = vpack.c.bf16 %v228_v3, %v227_v2  ;;  %v230_v6 = vld [vmem:[%s1423_s10 + $0x18] sm:$0xff]  ;;  %v231_v7 = vld [vmem:[%s1423_s10 + $0x20] sm:$0xff]  ;;  %v232_v8 = vld [vmem:[%s1423_s10 + $0x28] sm:$0xff] }
  0x1b   : > { %v260_v9 = vpack.c.bf16 %v230_v6, %v229_v4  ;;  %v261_v10 = vpack.c.bf16 %v232_v8, %v231_v7  ;;  %v233_v11 = vld [vmem:[%s1423_s10 + $0x30] sm:$0xff]  ;;  %v234_v12 = vld [vmem:[%s1423_s10 + $0x38] sm:$0xff]  ;;  %v235_v13 = vld [vmem:[%s1423_s10 + $0x40] sm:$0xff] }
  0x1c   : > { %1142 = vmatprep.mubr.msk.bf16.mxu0 %vm293_vm0, %v259_v5  ;;  %v236_v14 = vld [vmem:[%s1423_s10 + $0x48] sm:$0xff]  ;;  %v262_v15 = vpack.c.bf16 %v234_v12, %v233_v11  ;;  %v237_v17 = vld [vmem:[%s1423_s10 + $0x50] sm:$0xff]  ;;  %v238_v18 = vld [vmem:[%s1423_s10 + $0x58] sm:$0xff] }
  0x1d   : > { %1143 = vmatmul.mubr.msk.bf16.vlgmr.msra.gmra.mrb[0].mxu0 %vm293_vm0, %v260_v9  ;;  %v263_v16 = vpack.c.bf16 %v236_v14, %v235_v13  ;;  %v239_v19 = vld [vmem:[%s1423_s10 + $0x60] sm:$0xff]  ;;  %v240_v20 = vld [vmem:[%s1423_s10 + $0x68] sm:$0xff]  ;;  %v264_v21 = vpack.c.bf16 %v238_v18, %v237_v17  ;;  %v241_v23 = vld [vmem:[%s1423_s10 + $0x70] sm:$0xff] }
  0x1e   : > { %1146 = vmatprep.mubr.msk.bf16.mxu0 %vm293_vm0, %v261_v10  ;;  %v265_v22 = vpack.c.bf16 %v240_v20, %v239_v19  ;;  %v242_v24 = vld [vmem:[%s1423_s10 + $0x78] sm:$0xff]  ;;  %v243_v25 = vld [vmem:[%s1423_s10 + $0x80] sm:$0xff]  ;;  %v244_v26 = vld [vmem:[%s1423_s10 + $0x88] sm:$0xff] }
  0x1f   : > { %v266_v27 = vpack.c.bf16 %v242_v24, %v241_v23  ;;  %v267_v28 = vpack.c.bf16 %v244_v26, %v243_v25  ;;  %v245_v29 = vld [vmem:[%s1423_s10 + $0x90] sm:$0xff]  ;;  %v246_v30 = vld [vmem:[%s1423_s10 + $0x98] sm:$0xff]  ;;  %v247_v31 = vld [vmem:[%s1423_s10 + $0xa0] sm:$0xff] }
  0x20   : > { %v248_v32 = vld [vmem:[%s1423_s10 + $0xa8] sm:$0xff]  ;;  %v268_v33 = vpack.c.bf16 %v246_v30, %v245_v29  ;;  %v249_v35 = vld [vmem:[%s1423_s10 + $0xb0] sm:$0xff]  ;;  %v250_v36 = vld [vmem:[%s1423_s10 + $0xb8] sm:$0xff] }
  0x21   : > { %v269_v34 = vpack.c.bf16 %v248_v32, %v247_v31  ;;  %v251_v37 = vld [vmem:[%s1423_s10 + $0xc0] sm:$0xff]  ;;  %v252_v38 = vld [vmem:[%s1423_s10 + $0xc8] sm:$0xff]  ;;  %v270_v39 = vpack.c.bf16 %v250_v36, %v249_v35  ;;  %v253_v41 = vld [vmem:[%s1423_s10 + $0xd0] sm:$0xff] }
  0x22   : > { %v271_v40 = vpack.c.bf16 %v252_v38, %v251_v37  ;;  %v254_v42 = vld [vmem:[%s1423_s10 + $0xd8] sm:$0xff]  ;;  %v255_v43 = vld [vmem:[%s1423_s10 + $0xe0] sm:$0xff]  ;;  %v256_v44 = vld [vmem:[%s1423_s10 + $0xe8] sm:$0xff] }
  0x23   : > { %v272_v45 = vpack.c.bf16 %v254_v42, %v253_v41  ;;  %v273_v46 = vpack.c.bf16 %v256_v44, %v255_v43  ;;  %v257_v47 = vld [vmem:[%s1423_s10 + $0xf0] sm:$0xff]  ;;  %v258_v48 = vld [vmem:[%s1423_s10 + $0xf8] sm:$0xff]  ;;  %s1339_s10 = smov [#allocation2]  }
  0x24   : > { %v274_v49 = vpack.c.bf16 %v258_v48, %v257_v47  ;;  %s1276_s11 = sshll.u32 %s1339_s10, 4  ;;  %s1277_s11 = int_to_ptr.vmem [resolvable:$false] %s1276_s11 }
  0x25   : > { %1147 = vmatmul.mubr.msk.bf16.gmra.mrb[4].mxu0 %vm293_vm0, %v262_v15  ;;  %s1278_s12 = scalar_lea.vmem %s1277_s11, 64  ;;  %p1279_p0 = scmp.lt.s32.totalorder %s1639_s30, %s1277_s11 }
  0x26   : > { %1150 = vmatprep.mubr.msk.bf16.mxu0 %vm293_vm0, %v263_v16  ;;  %p1280_p1 = scmp.lt.s32.totalorder %s1278_s12, %s1272_s9 }
  0x28   : > { %p1281_p2 = por %p1280_p1, %p1279_p0 }
  0x2a   : > { %p1282_p3 = pnand %p1281_p2, %p1275_p13 }
  0x2d   : > { %1151 = vmatmul.mubr.msk.bf16.gmra.mrb[8].mxu0 %vm293_vm0, %v264_v21 }
  0x2e   : > { %1154 = vmatprep.mubr.msk.bf16.mxu0 %vm293_vm0, %v265_v22 }
  0x35   : > { %1155 = vmatmul.mubr.msk.bf16.gmra.mrb[12].mxu0 %vm293_vm0, %v266_v27 }
  0x36   : > { %1158 = vmatprep.mubr.msk.bf16.mxu0 %vm293_vm0, %v267_v28 }
  0x3d   : > { %1159 = vmatmul.mubr.msk.bf16.gmra.mrb[16].mxu0 %vm293_vm0, %v268_v33 }
  0x3e   : > { %1162 = vmatprep.mubr.msk.bf16.mxu0 %vm293_vm0, %v269_v34 }
  0x45   : > { %1163 = vmatmul.mubr.msk.bf16.gmra.mrb[20].mxu0 %vm293_vm0, %v270_v39 }
  0x46   : > { %1166 = vmatprep.mubr.msk.bf16.mxu0 %vm293_vm0, %v271_v40 }
  0x4d   : > { %1167 = vmatmul.mubr.msk.bf16.gmra.mrb[24].mxu0 %vm293_vm0, %v272_v45 }
  0x4e   : > { %1170 = vmatprep.mubr.msk.bf16.mxu0 %vm293_vm0, %v273_v46 }
  0x55   : > { %1171 = vmatmul.mubr.msk.bf16.gmra.mrb[28].mxu0 %vm293_vm0, %v274_v49 }
  0xf0   : > { %v1144_v59 = vpop.f32.mrb[0].mxu0 }
  0xf1   : > { %v385_v60 = vadd.f32 %v1144_v59, %v1494_v58  ;;  %v376_v61 = vpop.f32.mrb[1].mxu0 }
  0xf2   : > { %v377_v62 = vadd.f32 %v376_v61, %v1494_v58  ;;  %v1145_v63 = vpop.f32.mrb[2].mxu0 }
  0xf3   : > { %v388_v0 = vadd.f32 %v1145_v63, %v1494_v58  ;;  %v379_v1 = vpop.f32.mrb[3].mxu0  ;;  %v505_v3 = vmax.f32 %v385_v60, 0.0 }
  0xf4   : > { %v380_v2 = vadd.f32 %v379_v1, %v1494_v58  ;;  %v503_v5 = vmax.f32 %v377_v62, 0.0 }
  0xf5   : > { %v506_v4 = vmax.f32 %v388_v0, 0.0 }
  0xf6   : > { %v504_v6 = vmax.f32 %v380_v2, 0.0 }
  0xf7   : > { %v536_v7 = vpack.c.bf16 %v506_v4, %v505_v3 }
  0xf8   : > { %v1148_v8 = vpop.f32.mrb[4].mxu0  ;;  %v535_v9 = vpack.c.bf16 %v504_v6, %v503_v5 }
  0xf9   : > { %v401_v10 = vadd.f32 %v1148_v8, %v1494_v58  ;;  %v392_v11 = vpop.f32.mrb[5].mxu0 }
  0xfa   : > { %v393_v12 = vadd.f32 %v392_v11, %v1494_v58  ;;  %v1149_v13 = vpop.f32.mrb[6].mxu0  ;;  %1176 = vmatprep.mubr.msk.bf16.mxu1 %vm559_vm2, %v535_v9 }
  0xfb   : > { %v404_v14 = vadd.f32 %v1149_v13, %v1494_v58  ;;  %v395_v15 = vpop.f32.mrb[7].mxu0  ;;  %1177 = vmatmul.mubr.msk.bf16.vlgmr.msra.gmra.mrb[0].mxu1 %vm559_vm2, %v536_v7  ;;  %v509_v17 = vmax.f32 %v401_v10, 0.0 }
  0xfc   : > { %v396_v16 = vadd.f32 %v395_v15, %v1494_v58  ;;  %v507_v19 = vmax.f32 %v393_v12, 0.0 }
  0xfd   : > { %v510_v18 = vmax.f32 %v404_v14, 0.0 }
  0xfe   : > { %v508_v20 = vmax.f32 %v396_v16, 0.0 }
  0xff   : > { %v538_v21 = vpack.c.bf16 %v510_v18, %v509_v17 }
 0x100   : > { %v537_v22 = vpack.c.bf16 %v508_v20, %v507_v19  ;;  %v1152_v23 = vpop.f32.mrb[8].mxu0 }
 0x101   : > { %v417_v24 = vadd.f32 %v1152_v23, %v1494_v58  ;;  %v408_v25 = vpop.f32.mrb[9].mxu0 }
 0x102   : > { %v409_v26 = vadd.f32 %v408_v25, %v1494_v58  ;;  %v1153_v27 = vpop.f32.mrb[10].mxu0  ;;  %1180 = vmatprep.mubr.msk.bf16.mxu1 %vm559_vm2, %v537_v22 }
 0x103   : > { %v420_v28 = vadd.f32 %v1153_v27, %v1494_v58  ;;  %v411_v29 = vpop.f32.mrb[11].mxu0  ;;  %1181 = vmatmul.mubr.msk.bf16.gmra.mrb[4].mxu1 %vm559_vm2, %v538_v21  ;;  %v513_v31 = vmax.f32 %v417_v24, 0.0 }
 0x104   : > { %v412_v30 = vadd.f32 %v411_v29, %v1494_v58  ;;  %v511_v33 = vmax.f32 %v409_v26, 0.0 }
 0x105   : > { %v514_v32 = vmax.f32 %v420_v28, 0.0 }
 0x106   : > { %v512_v34 = vmax.f32 %v412_v30, 0.0 }
 0x107   : > { %v540_v35 = vpack.c.bf16 %v514_v32, %v513_v31 }
 0x108   : > { %v539_v36 = vpack.c.bf16 %v512_v34, %v511_v33  ;;  %v1156_v37 = vpop.f32.mrb[12].mxu0 }
 0x109   : > { %v433_v38 = vadd.f32 %v1156_v37, %v1494_v58  ;;  %v424_v39 = vpop.f32.mrb[13].mxu0 }
 0x10a   : > { %v425_v40 = vadd.f32 %v424_v39, %v1494_v58  ;;  %v1157_v41 = vpop.f32.mrb[14].mxu0  ;;  %1184 = vmatprep.mubr.msk.bf16.mxu1 %vm559_vm2, %v539_v36 }
 0x10b   : > { %v436_v42 = vadd.f32 %v1157_v41, %v1494_v58  ;;  %v427_v43 = vpop.f32.mrb[15].mxu0  ;;  %1185 = vmatmul.mubr.msk.bf16.gmra.mrb[8].mxu1 %vm559_vm2, %v540_v35  ;;  %v517_v45 = vmax.f32 %v433_v38, 0.0 }
 0x10c   : > { %v428_v44 = vadd.f32 %v427_v43, %v1494_v58  ;;  %v515_v47 = vmax.f32 %v425_v40, 0.0 }
 0x10d   : > { %v518_v46 = vmax.f32 %v436_v42, 0.0 }
 0x10e   : > { %v516_v48 = vmax.f32 %v428_v44, 0.0 }
 0x10f   : > { %v542_v49 = vpack.c.bf16 %v518_v46, %v517_v45 }
 0x110   : > { %v541_v50 = vpack.c.bf16 %v516_v48, %v515_v47  ;;  %v1160_v52 = vpop.f32.mrb[16].mxu0 }
 0x111   : > { %v449_v53 = vadd.f32 %v1160_v52, %v1494_v58  ;;  %v440_v59 = vpop.f32.mrb[17].mxu0  ;;  %v1337_v52 = vmov 15  }
 0x112   : > { %v441_v60 = vadd.f32 %v440_v59, %v1494_v58  ;;  %v1161_v61 = vpop.f32.mrb[18].mxu0  ;;  %1188 = vmatprep.mubr.msk.bf16.mxu1 %vm559_vm2, %v541_v50  ;;  %1259 = vset.pattern.permute.xlu0 %v1337_v52 }
 0x113   : > { %v452_v62 = vadd.f32 %v1161_v61, %v1494_v58  ;;  %v443_v63 = vpop.f32.mrb[19].mxu0  ;;  %1189 = vmatmul.mubr.msk.bf16.gmra.mrb[12].mxu1 %vm559_vm2, %v542_v49  ;;  %v521_v1 = vmax.f32 %v449_v53, 0.0  ;;  %v1075_v49 = vcombine.low %v1479_v51, %v1479_v51  ;;  %822 = vperm.xlu0 %1259, %v1489_v57  }
 0x114   : > { %v444_v0 = vadd.f32 %v443_v63, %v1494_v58  ;;  %v519_v3 = vmax.f32 %v441_v60, 0.0 }
 0x115   : > { %v522_v2 = vmax.f32 %v452_v62, 0.0  ;;  %v1547_v50 = vrot.slane %v1075_v49, 1 }
 0x116   : > { %v520_v4 = vmax.f32 %v444_v0, 0.0 }
 0x117   : > { %v544_v5 = vpack.c.bf16 %v522_v2, %v521_v1 }
 0x118   : > { %v543_v6 = vpack.c.bf16 %v520_v4, %v519_v3  ;;  %v1164_v7 = vpop.f32.mrb[20].mxu0 }
 0x119   : > { %v465_v8 = vadd.f32 %v1164_v7, %v1494_v58  ;;  %v456_v9 = vpop.f32.mrb[21].mxu0 }
 0x11a   : > { %v457_v10 = vadd.f32 %v456_v9, %v1494_v58  ;;  %v1165_v11 = vpop.f32.mrb[22].mxu0  ;;  %1192 = vmatprep.mubr.msk.bf16.mxu1 %vm559_vm2, %v543_v6 }
 0x11b   : > { %v525_v12 = vmax.f32 %v465_v8, 0.0  ;;  %v468_v13 = vadd.f32 %v1165_v11, %v1494_v58  ;;  %v459_v14 = vpop.f32.mrb[23].mxu0  ;;  %1193 = vmatmul.mubr.msk.bf16.gmra.mrb[16].mxu1 %vm559_vm2, %v544_v5 }
 0x11c   : > { %v523_v15 = vmax.f32 %v457_v10, 0.0  ;;  %v460_v16 = vadd.f32 %v459_v14, %v1494_v58 }
 0x11d   : > { %v526_v17 = vmax.f32 %v468_v13, 0.0 }
 0x11e   : > { %v524_v18 = vmax.f32 %v460_v16, 0.0 }
 0x11f   : > { %v546_v19 = vpack.c.bf16 %v526_v17, %v525_v12 }
 0x120   : > { %v545_v20 = vpack.c.bf16 %v524_v18, %v523_v15  ;;  %v1168_v21 = vpop.f32.mrb[24].mxu0 }
 0x121   : > { %v481_v22 = vadd.f32 %v1168_v21, %v1494_v58  ;;  %v472_v23 = vpop.f32.mrb[25].mxu0 }
 0x122   : > { %v473_v24 = vadd.f32 %v472_v23, %v1494_v58  ;;  %v1169_v25 = vpop.f32.mrb[26].mxu0  ;;  %1196 = vmatprep.mubr.msk.bf16.mxu1 %vm559_vm2, %v545_v20 }
 0x123   : > { %v529_v26 = vmax.f32 %v481_v22, 0.0  ;;  %v484_v27 = vadd.f32 %v1169_v25, %v1494_v58  ;;  %v475_v28 = vpop.f32.mrb[27].mxu0  ;;  %1197 = vmatmul.mubr.msk.bf16.gmra.mrb[20].mxu1 %vm559_vm2, %v546_v19 }
 0x124   : > { %v527_v29 = vmax.f32 %v473_v24, 0.0  ;;  %v476_v30 = vadd.f32 %v475_v28, %v1494_v58 }
 0x125   : > { %v530_v31 = vmax.f32 %v484_v27, 0.0 }
 0x126   : > { %v528_v32 = vmax.f32 %v476_v30, 0.0 }
 0x127   : > { %v548_v33 = vpack.c.bf16 %v530_v31, %v529_v26 }
 0x128   : > { %v547_v34 = vpack.c.bf16 %v528_v32, %v527_v29  ;;  %v1172_v35 = vpop.f32.mrb[28].mxu0 }
 0x129   : > { %v497_v36 = vadd.f32 %v1172_v35, %v1494_v58  ;;  %v488_v37 = vpop.f32.mrb[29].mxu0 }
 0x12a   : > { %v489_v38 = vadd.f32 %v488_v37, %v1494_v58  ;;  %v1173_v39 = vpop.f32.mrb[30].mxu0  ;;  %1200 = vmatprep.mubr.msk.bf16.mxu1 %vm559_vm2, %v547_v34 }
 0x12b   : > { %v533_v40 = vmax.f32 %v497_v36, 0.0  ;;  %v500_v41 = vadd.f32 %v1173_v39, %v1494_v58  ;;  %v491_v42 = vpop.f32.mrb[31].mxu0  ;;  %1201 = vmatmul.mubr.msk.bf16.gmra.mrb[24].mxu1 %vm559_vm2, %v548_v33 }
 0x12c   : > { %v531_v43 = vmax.f32 %v489_v38, 0.0  ;;  %v492_v44 = vadd.f32 %v491_v42, %v1494_v58  ;;  %v1552_v58 = vpop.permute.xlu0 %556 }
 0x12d   : > { %v534_v45 = vmax.f32 %v500_v41, 0.0 }
 0x12e   : > { %v532_v46 = vmax.f32 %v492_v44, 0.0 }
 0x12f   : > { %v550_v47 = vpack.c.bf16 %v534_v45, %v533_v40 }
 0x130   : > { %v549_v48 = vpack.c.bf16 %v532_v46, %v531_v43 }
 0x132   : > { %1204 = vmatprep.mubr.msk.bf16.mxu1 %vm559_vm2, %v549_v48 }
 0x133   : > { %1205 = vmatmul.mubr.msk.bf16.gmra.mrb[28].mxu1 %vm559_vm2, %v550_v47 }
 0x134   : > { %1136 = vmatprep.mubr.msk.bf16.mxu1 %vm831_vm3, %v1547_v50 }
 0x1ce   : > { %v1178_v53 = vpop.f32.mrb[0].mxu1 }
 0x1cf   : > { %v655_v59 = vadd.f32 %v1178_v53, %v1552_v58  ;;  %v646_v60 = vpop.f32.mrb[1].mxu1 }
 0x1d0   : > { %v647_v61 = vadd.f32 %v646_v60, %v1552_v58  ;;  %v1179_v62 = vpop.f32.mrb[2].mxu1 }
 0x1d1   : > { %v658_v51 = vadd.f32 %v1179_v62, %v1552_v58  ;;  %v649_v63 = vpop.f32.mrb[3].mxu1  ;;  %v775_v1 = vmax.f32 %v655_v59, 0.0 }
 0x1d2   : > { %v650_v0 = vadd.f32 %v649_v63, %v1552_v58  ;;  %v773_v3 = vmax.f32 %v647_v61, 0.0 }
 0x1d3   : > { %v776_v2 = vmax.f32 %v658_v51, 0.0 }
 0x1d4   : > { %v774_v4 = vmax.f32 %v650_v0, 0.0 }
 0x1d5   : > { %v1558_v5 = vpack.c.bf16 %v776_v2, %v775_v1 }
 0x1d6   : > { %v1560_v57 = vpack.c.bf16 %v774_v4, %v773_v3  ;;  %v1182_v6 = vpop.f32.mrb[4].mxu1 }
 0x1d7   : > { %v671_v7 = vadd.f32 %v1182_v6, %v1552_v58  ;;  %v662_v8 = vpop.f32.mrb[5].mxu1 }
 0x1d8   : > { %v663_v9 = vadd.f32 %v662_v8, %v1552_v58  ;;  %v1183_v10 = vpop.f32.mrb[6].mxu1 }
 0x1d9   : > { %v674_v11 = vadd.f32 %v1183_v10, %v1552_v58  ;;  %v665_v12 = vpop.f32.mrb[7].mxu1  ;;  %v779_v14 = vmax.f32 %v671_v7, 0.0  ;;  %v836_v10 = vsel %vm831_vm3, %v1560_v57, 0 }
 0x1da   : > { %v666_v13 = vadd.f32 %v665_v12, %v1552_v58  ;;  %v777_v16 = vmax.f32 %v663_v9, 0.0 }
 0x1db   : > { %v780_v15 = vmax.f32 %v674_v11, 0.0 }
 0x1dc   : > { %v778_v17 = vmax.f32 %v666_v13, 0.0 }
 0x1dd   : > { %v1566_v18 = vpack.c.bf16 %v780_v15, %v779_v14 }
 0x1de   : > { %v1568_v19 = vpack.c.bf16 %v778_v17, %v777_v16  ;;  %v1186_v20 = vpop.f32.mrb[8].mxu1 }
 0x1df   : > { %v687_v21 = vadd.f32 %v1186_v20, %v1552_v58  ;;  %v678_v22 = vpop.f32.mrb[9].mxu1 }
 0x1e0   : > { %v679_v23 = vadd.f32 %v678_v22, %v1552_v58  ;;  %v1187_v24 = vpop.f32.mrb[10].mxu1 }
 0x1e1   : > { %v690_v25 = vadd.f32 %v1187_v24, %v1552_v58  ;;  %v681_v26 = vpop.f32.mrb[11].mxu1  ;;  %v783_v28 = vmax.f32 %v687_v21, 0.0 }
 0x1e2   : > { %v682_v27 = vadd.f32 %v681_v26, %v1552_v58  ;;  %v781_v30 = vmax.f32 %v679_v23, 0.0  ;;  %v839_v26 = vsel %vm831_vm3, %v1558_v5, 0 }
 0x1e3   : > { %v784_v29 = vmax.f32 %v690_v25, 0.0 }
 0x1e4   : > { %v782_v31 = vmax.f32 %v682_v27, 0.0 }
 0x1e5   : > { %v1574_v32 = vpack.c.bf16 %v784_v29, %v783_v28 }
 0x1e6   : > { %v1576_v33 = vpack.c.bf16 %v782_v31, %v781_v30  ;;  %v1190_v34 = vpop.f32.mrb[12].mxu1 }
 0x1e7   : > { %v703_v35 = vadd.f32 %v1190_v34, %v1552_v58  ;;  %v694_v36 = vpop.f32.mrb[13].mxu1 }
 0x1e8   : > { %v695_v37 = vadd.f32 %v694_v36, %v1552_v58  ;;  %v1191_v38 = vpop.f32.mrb[14].mxu1 }
 0x1e9   : > { %v706_v39 = vadd.f32 %v1191_v38, %v1552_v58  ;;  %v697_v40 = vpop.f32.mrb[15].mxu1  ;;  %v787_v42 = vmax.f32 %v703_v35, 0.0 }
 0x1ea   : > { %v698_v41 = vadd.f32 %v697_v40, %v1552_v58  ;;  %v785_v44 = vmax.f32 %v695_v37, 0.0 }
 0x1eb   : > { %v788_v43 = vmax.f32 %v706_v39, 0.0 }
 0x1ec   : > { %v786_v45 = vmax.f32 %v698_v41, 0.0 }
 0x1ed   : > { %v1582_v46 = vpack.c.bf16 %v788_v43, %v787_v42  ;;  %v842_v42 = vsel %vm831_vm3, %v1568_v19, 0  ;;  %v848_v19 = vsel %vm831_vm3, %v1576_v33, 0  ;;  %v823_v33 = vpop.permute.xlu0 %822 }
 0x1ee   : > { %v1584_v47 = vpack.c.bf16 %v786_v45, %v785_v44  ;;  %v1194_v48 = vpop.f32.mrb[16].mxu1 }
 0x1ef   : > { %v719_v49 = vadd.f32 %v1194_v48, %v1552_v58  ;;  %v710_v52 = vpop.f32.mrb[17].mxu1 }
 0x1f0   : > { %v711_v53 = vadd.f32 %v710_v52, %v1552_v58  ;;  %v1195_v59 = vpop.f32.mrb[18].mxu1 }
 0x1f1   : > { %v722_v60 = vadd.f32 %v1195_v59, %v1552_v58  ;;  %v713_v61 = vpop.f32.mrb[19].mxu1  ;;  %v791_v51 = vmax.f32 %v719_v49, 0.0 }
 0x1f2   : > { %v714_v62 = vadd.f32 %v713_v61, %v1552_v58  ;;  %v789_v0 = vmax.f32 %v711_v53, 0.0  ;;  %v845_v61 = vsel %vm831_vm3, %v1566_v18, 0  ;;  %v857_v18 = vsel %vm831_vm3, %v1582_v46, 0 }
 0x1f3   : > { %v792_v63 = vmax.f32 %v722_v60, 0.0 }
 0x1f4   : > { %v790_v1 = vmax.f32 %v714_v62, 0.0  ;;  %v854_v62 = vsel %vm831_vm3, %v1584_v47, 0 }
 0x1f5   : > { %v814_v2 = vpack.c.bf16 %v792_v63, %v791_v51 }
 0x1f6   : > { %v813_v3 = vpack.c.bf16 %v790_v1, %v789_v0  ;;  %v1198_v4 = vpop.f32.mrb[20].mxu1 }
 0x1f7   : > { %v735_v6 = vadd.f32 %v1198_v4, %v1552_v58  ;;  %v726_v7 = vpop.f32.mrb[21].mxu1 }
 0x1f8   : > { %v727_v8 = vadd.f32 %v726_v7, %v1552_v58  ;;  %v1199_v9 = vpop.f32.mrb[22].mxu1  ;;  %1209 = vmatprep.subr.msk.bf16.mxu1 %vm831_vm3, %v813_v3 }
 0x1f9   : > { %v738_v11 = vadd.f32 %v1199_v9, %v1552_v58  ;;  %v729_v12 = vpop.f32.mrb[23].mxu1  ;;  %1121 = vmatpush3.bf16.xpose.msra.mxu1 %v836_v10  ;;  %v795_v14 = vmax.f32 %v735_v6, 0.0 }
 0x1fa   : > { %v730_v13 = vadd.f32 %v729_v12, %v1552_v58  ;;  %1210 = vmatprep.subr.msk.bf16.mxu1 %vm831_vm3, %v814_v2  ;;  %v793_v16 = vmax.f32 %v727_v8, 0.0 }
 0x1fb   : > { %v796_v15 = vmax.f32 %v738_v11, 0.0 }
 0x1fc   : > { %v794_v17 = vmax.f32 %v730_v13, 0.0 }
 0x1fd   : > { %v816_v20 = vpack.c.bf16 %v796_v15, %v795_v14 }
 0x1fe   : > { %v815_v21 = vpack.c.bf16 %v794_v17, %v793_v16  ;;  %v1202_v22 = vpop.f32.mrb[24].mxu1 }
 0x1ff   : > { %v751_v23 = vadd.f32 %v1202_v22, %v1552_v58  ;;  %v742_v24 = vpop.f32.mrb[25].mxu1 }
 0x200   : > { %v743_v57 = vadd.f32 %v742_v24, %v1552_v58  ;;  %v1203_v25 = vpop.f32.mrb[26].mxu1 }
 0x201   : > { %v754_v27 = vadd.f32 %v1203_v25, %v1552_v58  ;;  %v745_v28 = vpop.f32.mrb[27].mxu1  ;;  %1123 = vmatpush3.bf16.xpose.msra.mxu1 %v839_v26  ;;  %v799_v30 = vmax.f32 %v751_v23, 0.0 }
 0x202   : > { %v746_v29 = vadd.f32 %v745_v28, %v1552_v58  ;;  %1211 = vmatprep.subr.msk.bf16.mxu1 %vm831_vm3, %v815_v21  ;;  %v797_v34 = vmax.f32 %v743_v57, 0.0 }
 0x203   : > { %v800_v31 = vmax.f32 %v754_v27, 0.0 }
 0x204   : > { %v798_v35 = vmax.f32 %v746_v29, 0.0 }
 0x205   : > { %v818_v36 = vpack.c.bf16 %v800_v31, %v799_v30 }
 0x206   : > { %v817_v37 = vpack.c.bf16 %v798_v35, %v797_v34  ;;  %v1206_v38 = vpop.f32.mrb[28].mxu1 }
 0x207   : > { %v767_v39 = vadd.f32 %v1206_v38, %v1552_v58  ;;  %v758_v40 = vpop.f32.mrb[29].mxu1 }
 0x208   : > { %v759_v5 = vadd.f32 %v758_v40, %v1552_v58  ;;  %v1207_v41 = vpop.f32.mrb[30].mxu1 }
 0x209   : > { %v770_v43 = vadd.f32 %v1207_v41, %v1552_v58  ;;  %v761_v44 = vpop.f32.mrb[31].mxu1  ;;  %1125 = vmatpush3.bf16.xpose.msra.mxu1 %v842_v42  ;;  %v803_v48 = vmax.f32 %v767_v39, 0.0 }
 0x20a   : > { %v762_v45 = vadd.f32 %v761_v44, %v1552_v58  ;;  %1212 = vmatprep.subr.msk.bf16.mxu1 %vm831_vm3, %v816_v20  ;;  %v801_v52 = vmax.f32 %v759_v5, 0.0  ;;  %v851_v58 = vsel %vm831_vm3, %v1574_v32, 0  ;;  %v828_v32 = vrot.slane %v823_v33, %v278_v56 }
 0x20b   : > { %v804_v49 = vmax.f32 %v770_v43, 0.0 }
 0x20c   : > { %v802_v53 = vmax.f32 %v762_v45, 0.0 }
 0x20d   : > { %v820_v59 = vpack.c.bf16 %v804_v49, %v803_v48 }
 0x20e   : > { %v819_v60 = vpack.c.bf16 %v802_v53, %v801_v52 }
 0x211   : > { %1127 = vmatpush3.bf16.xpose.msra.mxu1 %v845_v61 }
 0x212   : > { %1213 = vmatprep.subr.msk.bf16.mxu1 %vm831_vm3, %v817_v37 }
 0x219   : > { %1129 = vmatpush3.bf16.xpose.msra.mxu1 %v848_v19 }
 0x21a   : > { %1214 = vmatprep.subr.msk.bf16.mxu1 %vm831_vm3, %v818_v36 }
 0x221   : > { %1131 = vmatpush3.bf16.xpose.msra.mxu1 %v851_v58 }
 0x222   : > { %1215 = vmatprep.subr.msk.bf16.mxu1 %vm831_vm3, %v819_v60 }
 0x229   : > { %1133 = vmatpush3.bf16.xpose.msra.mxu1 %v854_v62 }
 0x22a   : > { %1216 = vmatprep.subr.msk.bf16.mxu1 %vm831_vm3, %v820_v59 }
 0x231   : > { %1135 = vmatpush3.bf16.xpose.msra.mxu1 %v857_v18 }
 0x238   : > { %1137 = vmatmul.mubr.msk.bf16.vlgmr.msra.gmra.mrb[32].mxu1 %vm831_vm3, %v1547_v50  ;;  %v1338_v50 = vmov 1966171168  }
 0x239   : > { %v940_v56 = vunpack.c.l.s4 %v1338_v50 }
 0x23b   : > { %v941_v9 = vunpack.c.0.s8 %v940_v56 }
 0x23d   : > { %v944_v11 = vsub.s32 %v941_v9, %v1483_v55 }
 0x30b   : > { %v917_v51 = vpop.f32.mrb[32].mxu1 }
 0x30c   : > { %v918_v63 = vadd.f32 %v917_v51, %v828_v32  ;;  %v919_v0 = vpop.f32.mrb[33].mxu1 }
 0x30d   : > { %v920_v1 = vadd.f32 %v919_v0, %v828_v32  ;;  %v921_v47 = vpop.f32.mrb[34].mxu1 }
 0x30e   : > { %v1077_v2 = vmul.f32 -1.442695, %v918_v63  ;;  %v922_v3 = vpop.f32.mrb[35].mxu1 }
 0x30f   : > { %v1078_v4 = vmul.f32 -1.442695, %v920_v1 }
 0x310   : > { %1264 = vpow2.f32 %v1077_v2 }
 0x311   : > { %1266 = vpow2.f32 %v1078_v4 }
 0x31a   : > { %v1265_v46 = vpop.eup %1264 }
 0x31b   : > { %v1267_v6 = vpop.eup %1266  ;;  %v930_v7 = vadd.f32 1.0, %v1265_v46 }
 0x31c   : > { %v931_v8 = vadd.f32 1.0, %v1267_v6 }
 0x31d   : > { %1268 = vrcp.f32 %v930_v7 }
 0x31e   : > { %1270 = vrcp.f32 %v931_v8 }
 0x327   : > { %v1269_v10 = vpop.eup %1268 }
 0x328   : > { %v1271_v12 = vpop.eup %1270 }
 0x329   : > { %v938_v13 = vcombine.low %v1269_v10, %v1271_v12 }
 0x32b   : > { %v945_v14 = vrot.slane %v938_v13, %v944_v11 }
 0x32d   : > { %v952_v15 = vrot.slane %v945_v14, %v944_v11 }
 0x32f   : > { %958 = vst.msk [vmem:[%s203_s28] sm:$0x3] %vm956_vm4, %v952_v15 }
 0x330   : > { %1285 = shalt.err (!%p1282_p3)
}
 0x331   : > { %s1286_s29 = scalar_lea.hbm %s1637_s7, 32  ;;  %s1290_s19 = scalar_lea.hbm %s1683_s4, 128 }
 0x332   : > { %p1287_p4 = scmp.ne.s32.totalorder %s1637_s7, %s1286_s29  ;;  %p1291_p9 = scmp.lt.u32.totalorder %s1637_s7, %s1683_s4 }
 0x333   : > { %p1292_p10 = scmp.lt.u32.totalorder %s1290_s19, %s1286_s29  ;;  %p1294_p12 = scmp.lt.u32.totalorder %s1286_s29, %s1637_s7 }
 0x334   : > { %p1288_p7 = pnand %p1287_p4, %p1400_p5 }
 0x335   : > { %p1293_p11 = por %p1292_p10, %p1291_p9 }
 0x336   : > { %p1289_p8 = pneg %p1288_p7 }
 0x337   : > { %p1295_p13 = por %p1294_p12, %p1293_p11 }
 0x339   : > { %p1296_p0 = pnand %p1295_p13, %p1289_p8 }
 0x33b   : > { %1299 = shalt.err (!%p1296_p0)
}
 0x33c   : > { %1217 = dma.vmem_to_hbm [thread:$0]  (%p1400_p5), %s1639_s30, 32, %s1637_s7, %s960_s8  }
 0x33d PF: > { %p1223_p1 = scmp.ge.s32.totalorder %s1334_s18, 2  ;;  %s986_s23 = sand.u32 1, %s1322_s15  }
 0x33e   : > { %s987_s27 = scalar_lea.sflag [#allocation3], %s986_s23 }
 0x33f   : > { %p1220_p2 = pnand %p1223_p1, %p1404_p6 }
 0x341   : > { %1317 = dma.done.wait (!%p1220_p2), %s987_s27, 32  }
 0x342   : > { %1319 = vsyncadd (!%p1220_p2), %s987_s27, 4294967264  ;;  %p14_p3 = scmp.ge.s32.totalorder %s1388_s21, 6   ;;  %s1686_s15 = smov %s1326_s16 }
 0x343   : > { %s1687_s16 = smov %s1330_s17  ;;  %s1688_s17 = smov %s1398_s24 }
 0x344   : > { %s1689_s18 = smov %s1388_s21  ;;  %16 = sbr.rel (!%p14_p3) target bundleno = 3 (0x3), region = 71 }
 0x34b   :  { %992 = vsyncpa [#allocation3], 1 }
 0x34c   :  { %994 = vsyncpa [#allocation3 + $0x1], 1 }

</bundles_post_ra>
